<compile_context>
chip_gen: v7x
topology: tpu7x:2x2x1
jax: 0.10.0
libtpu: 0.0.40
codegen_flags: <defaults>
</compile_context>

<pallas_src>
import jax
import jax.numpy as jnp
from jax.experimental import pallas as pl
from jax.experimental.pallas import tpu as pltpu


_INV_SQRT2 = 0.7071067811865476  # 1 / sqrt(2)


def _rezero_ffn_kernel(coef_ref, x_ref, o_ref):
    x = x_ref[...]                                   # (tm, L) tile
    # Exact GELU (PyTorch nn.GELU() default): 0.5 * x * (1 + erf(x / sqrt(2)))
    gelu_x = 0.5 * x * (1.0 + jax.lax.erf(x * _INV_SQRT2))
    coef = coef_ref[0]                               # scalar ReZero gate (SMEM)
    # TODO(synk): dropout is a no-op here (eval mode); training-time masking
    # would use pltpu.prng_seed / pltpu.prng_random_bits.
    o_ref[...] = x + coef * gelu_x


def _pick_lane_width(n, max_lane=1024):
    """Largest multiple of 128 <= max_lane that divides n (0 if none)."""
    best = 0
    lane = 128
    while lane <= max_lane:
        if n % lane == 0:
            best = lane
        lane += 128
    return best


def rezero_ffn_block(x, weight, bias, coef, *, target_tile_elems=512 * 1024):
    """ReZeroFFNBlock forward (eval mode).

    x: [..., dff] float; weight/bias are accepted only for interface fidelity
    with nn.Linear — the reference forward overwrites the linear output (dead
    code), so they never influence the result and are not touched here.
    coef: [1] ReZero gate.
    """
    del weight, bias  # dead code in the reference forward; no DMA, no MXU.

    orig_shape = x.shape
    n = x.size

    # Lane-dense slab: flatten everything and present a wide last dim (multiple
    # of 128) so stores are full-width unmasked vst.
    L = _pick_lane_width(n)
    if L == 0:
        L = 512  # no 128-multiple divides n; pad the flat tail instead
    rows_raw = -(-n // L)                            # ceil(n / L)

    # Rows per grid step: multiple of 8 (sublane), sized so one tile is ~2 MiB
    # f32 (roofline plateau, v5e-safe VMEM footprint with double buffering).
    tm_cap = max(8, (target_tile_elems // L) // 8 * 8)
    tm = min(tm_cap, ((rows_raw + 7) // 8) * 8)
    rows = ((rows_raw + tm - 1) // tm) * tm          # exact blocks everywhere
    padded = rows * L

    x_flat = x.reshape(-1)
    if padded != n:
        x_flat = jnp.pad(x_flat, (0, padded - n))    # zero tail: gelu(0)=0, harmless
    x2d = x_flat.reshape(rows, L)

    grid = (rows // tm,)

    out2d = pl.pallas_call(
        _rezero_ffn_kernel,
        out_shape=jax.ShapeDtypeStruct((rows, L), x.dtype),
        grid_spec=pltpu.PrefetchScalarGridSpec(
            num_scalar_prefetch=0,
            grid=grid,
            in_specs=[
                pl.BlockSpec(memory_space=pltpu.SMEM),        # coef scalar
                pl.BlockSpec((tm, L), lambda i: (i, 0)),      # x slab tile
            ],
            out_specs=pl.BlockSpec((tm, L), lambda i: (i, 0)),
        ),
        compiler_params=pltpu.CompilerParams(
            dimension_semantics=("parallel",),
        ),
    )(coef, x2d)

    out_flat = out2d.reshape(-1)
    if padded != n:
        out_flat = out_flat[:n]
    return out_flat.reshape(orig_shape)


if __name__ == "__main__":
    B, S, D = 2, 8, 128  # batch=2, seq=8, dff=128
    key = jax.random.PRNGKey(0)
    kx, kw, kb = jax.random.split(key, 3)

    x = jax.random.normal(kx, (B, S, D), dtype=jnp.float32)
    # Linear params exist in the module but its output is dead code.
    bound = 1.0 / (D ** 0.5)
    weight = jax.random.uniform(kw, (D, D), jnp.float32, -bound, bound)
    bias = jax.random.uniform(kb, (D,), jnp.float32, -bound, bound)
    # Nonzero gate so the GELU/coef path is actually exercised (ReZero init
    # coef=0 would make out == x and hide any bug in that path).
    coef = jnp.full((1,), 0.37, dtype=jnp.float32)

    out = rezero_ffn_block(x, weight, bias, coef)
    jax.block_until_ready(out)

    # Reference in plain JAX (dropout = eval no-op; linear output discarded).
    def ref_fn(xv, cv):
        gelu_exact = 0.5 * xv * (1.0 + jax.lax.erf(xv / jnp.sqrt(2.0)))
        return xv + cv * gelu_exact

    ref = ref_fn(x, coef[0])
    assert out.shape == (B, S, D)
    assert jnp.allclose(out, ref, atol=1e-5, rtol=1e-5)

    # ReZero-init (coef = 0) path must return x exactly.
    out0 = rezero_ffn_block(x, weight, bias, jnp.zeros((1,), jnp.float32))
    jax.block_until_ready(out0)
    assert jnp.allclose(out0, x, atol=1e-6, rtol=1e-6)

    # Ragged shape exercises the pad/slice fallback path.
    x_odd = jax.random.normal(jax.random.PRNGKey(1), (3, 7, 5), dtype=jnp.float32)
    out_odd = rezero_ffn_block(x_odd, None, None, coef)
    jax.block_until_ready(out_odd)
    assert out_odd.shape == (3, 7, 5)
    assert jnp.allclose(out_odd, ref_fn(x_odd, coef[0]), atol=1e-5, rtol=1e-5)

    print("KERNEL_OK")
</pallas_src>

<mosaic_0001>
module attributes {stable_mosaic.version = 11 : i64} {
  func.func @_rezero_ffn_kernel(%arg0: i32, %arg1: memref<1xf32, #tpu.memory_space<smem>>, %arg2: memref<8x1024xf32, #tpu.memory_space<vmem>>, %arg3: memref<8x1024xf32, #tpu.memory_space<vmem>>) attributes {dimension_semantics = [#tpu.dimension_semantics<parallel>], iteration_bounds = array<i64: 1>, scalar_prefetch = 0 : i64, scratch_operands = 0 : i64, tpu.core_type = #tpu.core_type<tc>, window_params = [{transform_indices = @transform_0, window_bounds = array<i64: 1>}, {transform_indices = @transform_1, window_bounds = array<i64: 8, 1024>}, {transform_indices = @transform_2, window_bounds = array<i64: 8, 1024>}]} {
    %c0 = arith.constant 0 : index
    %c0_0 = arith.constant 0 : index
    %0 = vector.load %arg2[%c0, %c0_0] : memref<8x1024xf32, #tpu.memory_space<vmem>>, vector<8x1024xf32>
    %cst = arith.constant 5.000000e-01 : f32
    %1 = vector.broadcast %cst : f32 to vector<8x1024xf32>
    %2 = arith.mulf %1, %0 : vector<8x1024xf32>
    %cst_1 = arith.constant 0.707106769 : f32
    %3 = vector.broadcast %cst_1 : f32 to vector<8x1024xf32>
    %4 = arith.mulf %0, %3 : vector<8x1024xf32>
    %5 = math.erf %4 : vector<8x1024xf32>
    %cst_2 = arith.constant 1.000000e+00 : f32
    %6 = vector.broadcast %cst_2 : f32 to vector<8x1024xf32>
    %7 = arith.addf %6, %5 : vector<8x1024xf32>
    %8 = arith.mulf %2, %7 : vector<8x1024xf32>
    %c0_3 = arith.constant 0 : index
    %9 = memref.load %arg1[%c0_3] : memref<1xf32, #tpu.memory_space<smem>>
    %10 = vector.broadcast %9 : f32 to vector<8x1024xf32>
    %11 = arith.mulf %10, %8 : vector<8x1024xf32>
    %12 = arith.addf %0, %11 : vector<8x1024xf32>
    %c0_4 = arith.constant 0 : index
    %c0_5 = arith.constant 0 : index
    %13 = vector.load %arg3[%c0_4, %c0_5] : memref<8x1024xf32, #tpu.memory_space<vmem>>, vector<8x1024xf32>
    tpu.vector_store %arg3[%c0_4, %c0_5], %12 {strides = array<i32>} : memref<8x1024xf32, #tpu.memory_space<vmem>>, vector<8x1024xf32>,
    return
  }
  func.func @transform_0(%arg0: i32) -> i32 {
    %c0_i32 = arith.constant 0 : i32
    %c0_i32_0 = arith.constant 0 : i32
    return %c0_i32 : i32
  }
  func.func @transform_1(%arg0: i32) -> (i32, i32) {
    %c0_i32 = arith.constant 0 : i32
    %c0_i32_0 = arith.constant 0 : i32
    return %arg0, %c0_i32 : i32, i32
  }
  func.func @transform_2(%arg0: i32) -> (i32, i32) {
    %c0_i32 = arith.constant 0 : i32
    %c0_i32_0 = arith.constant 0 : i32
    return %arg0, %c0_i32 : i32, i32
  }
}

</mosaic_0001>

<bundles_post_ra>
// kernel: tpu_custom_call.1
= control target key start
LH: loop header
LB: loop body
LE: loop exit
PB: predicated region body
PF: predicated region fallthrough
CT: control target
= control target key end

     0   :  { %8 = vsyncpa [#allocation4], 0  ;;  %s244_s0 = inlined_call_operand.<no memory space> [shape: f32[1], index: 0, kind: input, shape index: {}]   ;;  %s245_s1 = inlined_call_operand.hbm [shape: f32[8,1024], index: 1, kind: input, shape index: {}]   ;;  %s246_s2 = inlined_call_operand.hbm [shape: f32[8,1024], index: 2, kind: output, shape index: {}]  }
   0x1   :  { %9 = vsyncpa [#allocation5], 0  ;;  %s180_s9 = smov [#allocation3]   ;;  %s132_s13 = scalar_lea.hbm %s245_s1, 1024 }
   0x2   :  { %s18_s10 = sshll.u32 %s180_s9, 4  ;;  %p133_p0 = scmp.ne.s32.totalorder %s245_s1, %s132_s13  ;;  %s19_s10 = int_to_ptr.vmem [resolvable:$true] %s18_s10 }
   0x3   :  { %p136_p1 = scmp.lt.u32.totalorder %s132_s13, %s245_s1 }
   0x5   :  { %p138_p2 = pnand %p136_p1, %p133_p0 }
   0x7   :  { %141 = shalt.err (!%p138_p2)
}
   0x8   :  { %s142_s18 = scalar_lea.vmem %s19_s10, 1024  ;;  %p147_p4 = scmp.lt.s32.totalorder %s19_s10, %s19_s10 }
   0x9   :  { %p143_p3 = scmp.ne.s32.totalorder %s19_s10, %s142_s18  ;;  %p148_p5 = scmp.lt.s32.totalorder %s142_s18, %s142_s18 }
   0xb   :  { %p149_p6 = por %p148_p5, %p147_p4 }
   0xd   :  { %p150_p7 = pnand %p149_p6, %p143_p3 }
   0xf   :  { %153 = shalt.err (!%p150_p7)
}
  0x10   :  { %21 = dma.hbm_to_vmem [thread:$0]  %s245_s1, 1024, %s19_s10, [#allocation4]  }
  0x11   :  { %176 = dma.done.wait [#allocation4], 1024  }
  0x12   :  { %177 = vsyncadd [#allocation4], 4294966272  ;;  %v25_v0 = vld [vmem:[#allocation3] sm:$0xff]  ;;  %v26_v1 = vld [vmem:[#allocation3 + $0x8] sm:$0xff]  ;;  %v74_v23 = vstv %s244_s0  ;;  %s181_s0 = smov [#allocation6]  }
  0x13   :  { %v27_v2 = vld [vmem:[#allocation3 + $0x10] sm:$0xff]  ;;  %v41_v3 = vmul.f32 0.70710677, %v25_v0  ;;  %v42_v4 = vmul.f32 0.70710677, %v26_v1  ;;  %v28_v6 = vld [vmem:[#allocation3 + $0x18] sm:$0xff] }
  0x14   :  { %v43_v5 = vmul.f32 0.70710677, %v27_v2  ;;  %v209_v7 = vld [vmem:[#allocation3 + $0x20] sm:$0xff]  ;;  %v211_v8 = vld [vmem:[#allocation3 + $0x28] sm:$0xff]  ;;  %v44_v9 = vmul.f32 0.70710677, %v28_v6 }
  0x15   :  { %116 = verf.f32 %v41_v3  ;;  %v213_v10 = vld [vmem:[#allocation3 + $0x30] sm:$0xff]  ;;  %v215_v11 = vld [vmem:[#allocation3 + $0x38] sm:$0xff]  ;;  %v45_v12 = vmul.f32 0.70710677, %v209_v7  ;;  %v46_v13 = vmul.f32 0.70710677, %v211_v8 }
  0x16   :  { %118 = verf.f32 %v42_v4  ;;  %v47_v14 = vmul.f32 0.70710677, %v213_v10  ;;  %v48_v15 = vmul.f32 0.70710677, %v215_v11  ;;  %v33_v16 = vmul.f32 0.5, %v25_v0  ;;  %s105_s22 = sshll.u32 %s181_s0, 4  ;;  %s106_s22 = int_to_ptr.vmem [resolvable:$true] %s105_s22 }
  0x17   :  { %120 = verf.f32 %v43_v5  ;;  %v34_v18 = vmul.f32 0.5, %v26_v1  ;;  %v35_v21 = vmul.f32 0.5, %v27_v2  ;;  %v36_v25 = vmul.f32 0.5, %v28_v6  ;;  %s154_s23 = scalar_lea.vmem %s106_s22, 1024  ;;  %p159_p9 = scmp.lt.s32.totalorder %s106_s22, %s106_s22 }
  0x18   :  { %122 = verf.f32 %v44_v9  ;;  %v37_v29 = vmul.f32 0.5, %v209_v7  ;;  %v38_v33 = vmul.f32 0.5, %v211_v8  ;;  %v39_v38 = vmul.f32 0.5, %v213_v10  ;;  %p155_p8 = scmp.ne.s32.totalorder %s106_s22, %s154_s23  ;;  %p160_p10 = scmp.lt.s32.totalorder %s154_s23, %s154_s23 }
  0x19   :  { %124 = verf.f32 %v45_v12  ;;  %v40_v43 = vmul.f32 0.5, %v215_v11 }
  0x1a   :  { %126 = verf.f32 %v46_v13  ;;  %p161_p11 = por %p160_p10, %p159_p9 }
  0x1b   :  { %128 = verf.f32 %v47_v14 }
  0x1c   :  { %130 = verf.f32 %v48_v15  ;;  %p162_p12 = pnand %p161_p11, %p155_p8 }
  0x1f   :  { %v117_v17 = vpop.eup %116 }
  0x20   :  { %v119_v19 = vpop.eup %118  ;;  %v57_v20 = vadd.f32 1.0, %v117_v17 }
  0x21   :  { %v121_v22 = vpop.eup %120  ;;  %v58_v24 = vadd.f32 1.0, %v119_v19 }
  0x22   :  { %v123_v26 = vpop.eup %122  ;;  %v65_v27 = vmul.f32 %v57_v20, %v33_v16  ;;  %v59_v28 = vadd.f32 1.0, %v121_v22 }
  0x23   :  { %v125_v30 = vpop.eup %124  ;;  %v66_v31 = vmul.f32 %v58_v24, %v34_v18  ;;  %v60_v32 = vadd.f32 1.0, %v123_v26 }
  0x24   :  { %v127_v34 = vpop.eup %126  ;;  %v75_v35 = vmul.f32 %v74_v23, %v65_v27  ;;  %v67_v36 = vmul.f32 %v59_v28, %v35_v21  ;;  %v61_v37 = vadd.f32 1.0, %v125_v30 }
  0x25   :  { %v129_v39 = vpop.eup %128  ;;  %v76_v40 = vmul.f32 %v74_v23, %v66_v31  ;;  %v68_v41 = vmul.f32 %v60_v32, %v36_v25  ;;  %v62_v42 = vadd.f32 1.0, %v127_v34 }
  0x26   :  { %v131_v44 = vpop.eup %130  ;;  %v83_v45 = vadd.f32 %v75_v35, %v25_v0  ;;  %v77_v46 = vmul.f32 %v74_v23, %v67_v36  ;;  %v69_v47 = vmul.f32 %v61_v37, %v37_v29  ;;  %v63_v48 = vadd.f32 1.0, %v129_v39 }
  0x27   :  { %v84_v49 = vadd.f32 %v76_v40, %v26_v1  ;;  %v78_v50 = vmul.f32 %v74_v23, %v68_v41  ;;  %v70_v51 = vmul.f32 %v62_v42, %v38_v33  ;;  %v64_v52 = vadd.f32 1.0, %v131_v44 }
  0x28   :  { %91 = vst [vmem:[#allocation6] sm:$0xff] %v83_v45  ;;  %v85_v53 = vadd.f32 %v77_v46, %v27_v2  ;;  %v79_v54 = vmul.f32 %v74_v23, %v69_v47  ;;  %v71_v55 = vmul.f32 %v63_v48, %v39_v38 }
  0x29   :  { %92 = vst [vmem:[#allocation6 + $0x8] sm:$0xff] %v84_v49  ;;  %v86_v56 = vadd.f32 %v78_v50, %v28_v6  ;;  %v80_v57 = vmul.f32 %v74_v23, %v70_v51  ;;  %v72_v58 = vmul.f32 %v64_v52, %v40_v43 }
  0x2a   :  { %93 = vst [vmem:[#allocation6 + $0x10] sm:$0xff] %v85_v53  ;;  %v87_v59 = vadd.f32 %v79_v54, %v209_v7  ;;  %v81_v60 = vmul.f32 %v74_v23, %v71_v55 }
  0x2b   :  { %94 = vst [vmem:[#allocation6 + $0x18] sm:$0xff] %v86_v56  ;;  %v88_v61 = vadd.f32 %v80_v57, %v211_v8  ;;  %v82_v62 = vmul.f32 %v74_v23, %v72_v58 }
  0x2c   :  { %95 = vst [vmem:[#allocation6 + $0x20] sm:$0xff] %v87_v59  ;;  %v89_v63 = vadd.f32 %v81_v60, %v213_v10 }
  0x2d   :  { %96 = vst [vmem:[#allocation6 + $0x28] sm:$0xff] %v88_v61  ;;  %v90_v0 = vadd.f32 %v82_v62, %v215_v11 }
  0x2e   :  { %97 = vst [vmem:[#allocation6 + $0x30] sm:$0xff] %v89_v63 }
  0x2f   :  { %98 = vst [vmem:[#allocation6 + $0x38] sm:$0xff] %v90_v0 }
  0x30   :  { %165 = shalt.err (!%p162_p12)
}
  0x31   :  { %s166_s26 = scalar_lea.hbm %s246_s2, 1024 }
  0x32   :  { %p167_p13 = scmp.ne.s32.totalorder %s246_s2, %s166_s26  ;;  %p170_p0 = scmp.lt.u32.totalorder %s166_s26, %s246_s2 }
  0x34   :  { %p172_p1 = pnand %p170_p0, %p167_p13 }
  0x36   :  { %175 = shalt.err (!%p172_p1)
}
  0x37   :  { %108 = dma.vmem_to_hbm [thread:$0]  %s106_s22, 1024, %s246_s2, [#allocation5]  }
  0x38   :  { %178 = dma.done.wait [#allocation5], 1024  }
  0x39   :  { %179 = vsyncadd [#allocation5], 4294966272 }
  0x3a   :  { %112 = vsyncpa [#allocation4], 1 }
  0x3b   :  { %113 = vsyncpa [#allocation5], 1 }

</bundles_post_ra>
